<compile_context>
chip_gen: v6e
topology: v6e:2x2x1
jax: 0.10.0
libtpu: 0.0.40
codegen_flags: <defaults>
</compile_context>

<pallas_src>
import functools

import jax
import jax.numpy as jnp
from jax.experimental import pallas as pl
from jax.experimental.pallas import tpu as pltpu


def mlp_kernel(x_ref, w1_ref, b1_ref, w2_ref, b2_ref, o_ref, *, approx_sigmoid=True):
    # x_ref:  [TB, D_in]   w1_ref: [D_in, H]   b1_ref: [1, H] (f32)
    # w2_ref: [1, H]       b2_ref: [1, 1] (SMEM scalar)
    # o_ref:  [1, TB]      (batch on the lane axis -> lane-dense stores)
    h = jnp.dot(x_ref[...], w1_ref[...], preferred_element_type=jnp.float32)
    h = jnp.maximum(h + b1_ref[...], 0.0)  # bias + ReLU in f32 on the VPU

    # Layer 2 (out_features == 1): contract H of the [1,H] weight row with the
    # H axis of h -> [1, TB] directly (no materialized h^T column result).
    z = jax.lax.dot_general(
        w2_ref[...].astype(jnp.float32), h,
        dimension_numbers=(((1,), (1,)), ((), ())),
        preferred_element_type=jnp.float32,
    )
    z = z + b2_ref[0, 0]  # scalar bias from SMEM

    # sigmoid(z) = 1 / (1 + exp(-z)); exp (and approx reciprocal) hit the EUP.
    if approx_sigmoid:
        out = pl.reciprocal(1.0 + jnp.exp(-z), approx=True)
    else:
        out = 1.0 / (1.0 + jnp.exp(-z))
    o_ref[...] = out.astype(o_ref.dtype)


def neural_net_forward(x, w1, b1, w2, b2, *, block_b=16384, approx_sigmoid=True):
    """Fused 2-layer MLP forward pass.

    x: [B, D_in]; w1: [D_in, H]; b1: [H]-like; w2: [1, H] (PyTorch [out, in])
    or [H, 1]; b2: scalar-like.  Returns [B, 1] float32.

    For large batches pass x (and w1) already in bfloat16: it halves the
    dominant HBM stream; accumulation stays f32 (no wrapper cast is done here,
    since that would add an extra HBM pass and cancel the win).
    """
    B, D_in = x.shape
    H = w1.shape[1]
    assert block_b % 128 == 0, "block_b must be a multiple of 128 (lane-dense output tiles)"

    b1_row = jnp.asarray(b1, jnp.float32).reshape(1, H)
    w2_row = jnp.asarray(w2).reshape(1, H)
    b2_s = jnp.asarray(b2, jnp.float32).reshape(1, 1)

    # --- Tile selection -----------------------------------------------------
    # Small batch: one full block (block == array dims, no (8,128) constraint).
    # Larger batch: lane-aligned tiles, capped at ceil(B/2) so the "parallel"
    # grid has >= 2 blocks (keeps both v7x TensorCores busy), ragged last block
    # (no jnp.pad; OOB output stores are discarded).
    if B <= 256:
        tb = B
    else:
        half = -(-B // 2)                  # ceil(B / 2)
        half = -(-half // 128) * 128       # round up to a lane multiple
        tb = min(block_b, half)
    n_blk = pl.cdiv(B, tb)

    # --- Explicit VMEM budget (lane padding counted) -------------------------
    #   x block (tb, D_in): last dim padded 16 -> 128, double-buffered
    #   h (tb, H) f32: padded 32 -> 128, plus a possible relayout copy for the
    #     layer-2 contraction
    #   output row (1, tb) f32 double-buffered + z temp
    x_item = jnp.dtype(x.dtype).itemsize
    per_row_bytes = 2 * 128 * x_item + 2 * 128 * 4 + 16
    vmem_limit = int(tb) * per_row_bytes + (2 << 20)  # +2 MiB weights / scratch headroom
    # (Default tb=16384 f32 -> ~36 MiB: fits v5e/v6e and v7x's 64 MiB physical.)

    # --- Advisory cost estimate ----------------------------------------------
    bytes_accessed = (x.size * x_item
                      + w1.size * jnp.dtype(w1.dtype).itemsize
                      + (2 * H + 1) * 4
                      + B * 4)
    cost = pl.CostEstimate(
        flops=2 * B * H * (D_in + 1),
        transcendentals=B,
        bytes_accessed=int(bytes_accessed),
    )

    out_row = pl.pallas_call(
        functools.partial(mlp_kernel, approx_sigmoid=approx_sigmoid),
        out_shape=jax.ShapeDtypeStruct((1, B), jnp.float32),
        grid_spec=pltpu.PrefetchScalarGridSpec(
            num_scalar_prefetch=0,
            grid=(n_blk,),
            in_specs=[
                pl.BlockSpec((tb, D_in), lambda i: (i, 0)),         # x streams per tile
                pl.BlockSpec((D_in, H), lambda i: (0, 0)),          # w1 VMEM-resident
                pl.BlockSpec((1, H), lambda i: (0, 0)),             # b1 VMEM-resident
                pl.BlockSpec((1, H), lambda i: (0, 0)),             # w2 row VMEM-resident
                pl.BlockSpec(memory_space=pltpu.MemorySpace.SMEM),  # b2 scalar in SMEM
            ],
            out_specs=pl.BlockSpec((1, tb), lambda i: (0, i)),      # lane-dense output row
        ),
        compiler_params=pltpu.CompilerParams(
            dimension_semantics=("parallel",),   # shards the batch axis across TCs on v7x
            vmem_limit_bytes=vmem_limit,
        ),
        cost_estimate=cost,
    )(x, w1, b1_row, w2_row, b2_s)

    # (1, B) lane-dense row -> (B, 1) column.
    return out_row.reshape(B, 1)


def init_params(key, input_size, hidden_size):
    """Deterministic init mimicking nn.Linear's U(-1/sqrt(fan_in), 1/sqrt(fan_in))."""
    k1, k2, k3, k4 = jax.random.split(key, 4)
    lim1 = 1.0 / jnp.sqrt(float(input_size))
    lim2 = 1.0 / jnp.sqrt(float(hidden_size))
    w1 = jax.random.uniform(k1, (input_size, hidden_size), jnp.float32, -lim1, lim1)  # [in, out]
    b1 = jax.random.uniform(k2, (1, hidden_size), jnp.float32, -lim1, lim1)
    w2 = jax.random.uniform(k3, (1, hidden_size), jnp.float32, -lim2, lim2)           # [out, in]
    b2 = jax.random.uniform(k4, (1, 1), jnp.float32, -lim2, lim2)
    return w1, b1, w2, b2


if __name__ == "__main__":
    input_size, hidden_size = 16, 32
    key = jax.random.PRNGKey(0)
    k_x, k_p, k_x2 = jax.random.split(key, 3)
    w1, b1, w2, b2 = init_params(k_p, input_size, hidden_size)

    def ref_fwd(xx):
        xx = xx.astype(jnp.float32)
        return jax.nn.sigmoid(jnp.maximum(xx @ w1.astype(jnp.float32) + b1, 0.0) @ w2.T + b2)

    # Small demo batch (single full block).
    x_small = jax.random.normal(k_x, (8, input_size), jnp.float32)
    out_small = jax.block_until_ready(neural_net_forward(x_small, w1, b1, w2, b2))
    assert out_small.shape == (8, 1)
    # Tolerance loosened slightly vs exact math: sigmoid uses the EUP approx reciprocal.
    assert jnp.allclose(out_small, ref_fwd(x_small), atol=5e-3)

    # Multi-block ragged path: B=600 with 256-wide tiles -> 3 blocks, last one
    # clipped (no jnp.pad, no extra HBM pass).
    x_big = jax.random.normal(k_x2, (600, input_size), jnp.float32)
    out_big = jax.block_until_ready(neural_net_forward(x_big, w1, b1, w2, b2, block_b=256))
    assert out_big.shape == (600, 1)
    assert jnp.allclose(out_big, ref_fwd(x_big), atol=5e-3)

    # bf16 streaming contract (caller supplies bf16 x/w1; accumulation stays f32).
    out_bf16 = jax.block_until_ready(
        neural_net_forward(x_big.astype(jnp.bfloat16), w1.astype(jnp.bfloat16),
                           b1, w2, b2, block_b=256))
    assert out_bf16.shape == (600, 1)
    assert jnp.allclose(out_bf16, ref_fwd(x_big.astype(jnp.bfloat16)), atol=2e-2)

    print("KERNEL_OK")
</pallas_src>

<mosaic_0001>
module attributes {stable_mosaic.version = 11 : i64} {
  func.func @mlp_kernel(%arg0: i32, %arg1: memref<8x16xf32, #tpu.memory_space<vmem>>, %arg2: memref<16x32xf32, #tpu.memory_space<vmem>>, %arg3: memref<1x32xf32, #tpu.memory_space<vmem>>, %arg4: memref<1x32xf32, #tpu.memory_space<vmem>>, %arg5: memref<1x1xf32, #tpu.memory_space<smem>>, %arg6: memref<1x8xf32, #tpu.memory_space<vmem>>) attributes {dimension_semantics = [#tpu.dimension_semantics<parallel>], iteration_bounds = array<i64: 1>, scalar_prefetch = 0 : i64, scratch_operands = 0 : i64, tpu.core_type = #tpu.core_type<tc>, window_params = [{transform_indices = @transform_0, window_bounds = array<i64: 8, 16>}, {pipeline_mode = #tpu.pipeline_mode<synchronous>, transform_indices = @transform_1, window_bounds = array<i64: 16, 32>}, {pipeline_mode = #tpu.pipeline_mode<synchronous>, transform_indices = @transform_2, window_bounds = array<i64: 1, 32>}, {pipeline_mode = #tpu.pipeline_mode<synchronous>, transform_indices = @transform_3, window_bounds = array<i64: 1, 32>}, {transform_indices = @transform_4, window_bounds = array<i64: 1, 1>}, {transform_indices = @transform_5, window_bounds = array<i64: 1, 8>}]} {
    %c0 = arith.constant 0 : index
    %c0_0 = arith.constant 0 : index
    %0 = vector.load %arg1[%c0, %c0_0] : memref<8x16xf32, #tpu.memory_space<vmem>>, vector<8x16xf32>
    %c0_1 = arith.constant 0 : index
    %c0_2 = arith.constant 0 : index
    %1 = vector.load %arg2[%c0_1, %c0_2] : memref<16x32xf32, #tpu.memory_space<vmem>>, vector<16x32xf32>
    %cst = arith.constant dense<0.000000e+00> : vector<8x32xf32>
    %2 = tpu.matmul %0, %1, %cst {dimension_numbers = #tpu.dot_dimension_numbers<[1], [0], [0], [1], [0, 0, 1, 1], [], []>} : vector<8x16xf32>, vector<16x32xf32>, vector<8x32xf32> -> vector<8x32xf32>
    %c0_3 = arith.constant 0 : index
    %c0_4 = arith.constant 0 : index
    %3 = vector.load %arg3[%c0_3, %c0_4] : memref<1x32xf32, #tpu.memory_space<vmem>>, vector<1x32xf32>
    %4 = vector.broadcast %3 : vector<1x32xf32> to vector<8x32xf32>
    %5 = arith.addf %2, %4 : vector<8x32xf32>
    %cst_5 = arith.constant 0.000000e+00 : f32
    %6 = vector.broadcast %cst_5 : f32 to vector<8x32xf32>
    %7 = arith.maximumf %5, %6 : vector<8x32xf32>
    %c0_6 = arith.constant 0 : index
    %c0_7 = arith.constant 0 : index
    %8 = vector.load %arg4[%c0_6, %c0_7] : memref<1x32xf32, #tpu.memory_space<vmem>>, vector<1x32xf32>
    %cst_8 = arith.constant dense<0.000000e+00> : vector<1x8xf32>
    %9 = tpu.matmul %8, %7, %cst_8 {dimension_numbers = #tpu.dot_dimension_numbers<[1], [1], [0], [0], [0, 0, 1, 0], [], []>} : vector<1x32xf32>, vector<8x32xf32>, vector<1x8xf32> -> vector<1x8xf32>
    %c0_9 = arith.constant 0 : index
    %c0_10 = arith.constant 0 : index
    %10 = memref.load %arg5[%c0_9, %c0_10] : memref<1x1xf32, #tpu.memory_space<smem>>
    %11 = vector.broadcast %10 : f32 to vector<1x8xf32>
    %12 = arith.addf %9, %11 : vector<1x8xf32>
    %cst_11 = arith.constant 0.000000e+00 : f32
    %13 = vector.broadcast %cst_11 : f32 to vector<1x8xf32>
    %14 = arith.subf %13, %12 : vector<1x8xf32>
    %15 = math.exp %14 : vector<1x8xf32>
    %cst_12 = arith.constant 1.000000e+00 : f32
    %16 = vector.broadcast %cst_12 : f32 to vector<1x8xf32>
    %17 = arith.addf %16, %15 : vector<1x8xf32>
    %18 = tpu.reciprocal %17 {approx = true} : vector<1x8xf32> -> vector<1x8xf32>
    %c0_13 = arith.constant 0 : index
    %c0_14 = arith.constant 0 : index
    %19 = vector.load %arg6[%c0_13, %c0_14] : memref<1x8xf32, #tpu.memory_space<vmem>>, vector<1x8xf32>
    tpu.vector_store %arg6[%c0_13, %c0_14], %18 {strides = array<i32>} : memref<1x8xf32, #tpu.memory_space<vmem>>, vector<1x8xf32>,
    return
  }
  func.func @transform_0(%arg0: i32) -> (i32, i32) {
    %c0_i32 = arith.constant 0 : i32
    %c0_i32_0 = arith.constant 0 : i32
    return %arg0, %c0_i32 : i32, i32
  }
  func.func @transform_1(%arg0: i32) -> (i32, i32) {
    %c0_i32 = arith.constant 0 : i32
    %c0_i32_0 = arith.constant 0 : i32
    %c0_i32_1 = arith.constant 0 : i32
    return %c0_i32, %c0_i32_0 : i32, i32
  }
  func.func @transform_2(%arg0: i32) -> (i32, i32) {
    %c0_i32 = arith.constant 0 : i32
    %c0_i32_0 = arith.constant 0 : i32
    %c0_i32_1 = arith.constant 0 : i32
    return %c0_i32, %c0_i32_0 : i32, i32
  }
  func.func @transform_3(%arg0: i32) -> (i32, i32) {
    %c0_i32 = arith.constant 0 : i32
    %c0_i32_0 = arith.constant 0 : i32
    %c0_i32_1 = arith.constant 0 : i32
    return %c0_i32, %c0_i32_0 : i32, i32
  }
  func.func @transform_4(%arg0: i32) -> (i32, i32) {
    %c0_i32 = arith.constant 0 : i32
    %c0_i32_0 = arith.constant 0 : i32
    %c0_i32_1 = arith.constant 0 : i32
    return %c0_i32, %c0_i32_0 : i32, i32
  }
  func.func @transform_5(%arg0: i32) -> (i32, i32) {
    %c0_i32 = arith.constant 0 : i32
    %c0_i32_0 = arith.constant 0 : i32
    return %c0_i32, %arg0 : i32, i32
  }
}

</mosaic_0001>

<bundles_post_ra>
// kernel: tpu_custom_call.1
= control target key start
LH: loop header
LB: loop body
LE: loop exit
PB: predicated region body
PF: predicated region fallthrough
CT: control target
= control target key end

     0   :  { %11 = vsyncpa [#allocation4], 0  ;;  %s389_s0 = inlined_call_operand.hbm [shape: f32[8,16], index: 0, kind: input, shape index: {}]   ;;  %s390_s1 = inlined_call_operand.hbm [shape: f32[16,32], index: 1, kind: input, shape index: {}]   ;;  %s391_s2 = inlined_call_operand.vmem [shape: f32[1,32], index: 2, kind: input, shape index: {}]   ;;  %s392_s3 = inlined_call_operand.vmem [shape: f32[1,32], index: 3, kind: input, shape index: {}]   ;;  %s393_s4 = inlined_call_operand.<no memory space> [shape: f32[1,1], index: 4, kind: input, shape index: {}]   ;;  %s394_s5 = inlined_call_operand.hbm [shape: f32[1,8], index: 5, kind: output, shape index: {}]  }
   0x1   :  { %12 = vsyncpa [#allocation7], 0 }
   0x2   :  { %13 = vsyncpa [#allocation5], 0  ;;  %s334_s18 = smov [#allocation3]   ;;  %s335_s20 = smov [#allocation6]  }
   0x3   :  { %s20_s19 = sshll.u32 %s334_s18, 4  ;;  %s29_s21 = sshll.u32 %s335_s20, 4  ;;  %s21_s19 = int_to_ptr.vmem [resolvable:$true] %s20_s19  ;;  %s30_s21 = int_to_ptr.vmem [resolvable:$true] %s29_s21 }
   0x4   :  { %s276_s22 = scalar_lea.vmem %s21_s19, 128  ;;  %p281_p1 = scmp.lt.s32.totalorder %s21_s19, %s21_s19 }
   0x5   :  { %p277_p0 = scmp.ne.s32.totalorder %s21_s19, %s276_s22  ;;  %p282_p2 = scmp.lt.s32.totalorder %s276_s22, %s276_s22 }
   0x7   :  { %p283_p3 = por %p282_p2, %p281_p1 }
   0x9   :  { %p284_p4 = pnand %p283_p3, %p277_p0 }
   0xb   :  { %287 = shalt.err (!%p284_p4)
}
   0xc   :  { %23 = dma.hbm_to_vmem [thread:$0]  %s389_s0, 128, %s21_s19, [#allocation4]  }
   0xd   :  { %s296_s25 = scalar_lea.vmem %s30_s21, 256  ;;  %p301_p6 = scmp.lt.s32.totalorder %s30_s21, %s30_s21 }
   0xe   :  { %p297_p5 = scmp.ne.s32.totalorder %s30_s21, %s296_s25  ;;  %p302_p7 = scmp.lt.s32.totalorder %s296_s25, %s296_s25 }
  0x10   :  { %p303_p8 = por %p302_p7, %p301_p6 }
  0x12   :  { %p304_p9 = pnand %p303_p8, %p297_p5 }
  0x14   :  { %307 = shalt.err (!%p304_p9)
}
  0x15   :  { %s336_s26 = smov 128   ;;  %s337_s27 = smov 8  }
  0x16   :  { %35 = dma.hbm_to_vmem [thread:$0]  %s390_s1, 256, %s30_s21, [#allocation7], %s336_s26, %s336_s26, %s337_s27  }
  0x17   :  { %328 = dma.done.wait [#allocation4], 128  }
  0x18   :  { %329 = vsyncadd [#allocation4], 4294967168 }
  0x19   :  { %330 = dma.done.wait [#allocation7], 256  }
  0x1a   :  { %331 = vsyncadd [#allocation7], 4294967040  ;;  %v338_v0 = vmov 0.0   ;;  %vm339_vm0 = vmmov 0   ;;  %v50_v1 = vld [vmem:[#allocation6 + $0x8] sm:$0xff]  ;;  %v49_v2 = vld [vmem:[#allocation6] sm:$0xff]  ;;  %v135_v10 = vstv %s393_s4 }
  0x1b   :  { %245 = vmatprep.subr.mxu0 %v338_v0  ;;  %249 = vmatprep.mubr.msk.f32.mxu0 %vm339_vm0, %v338_v0  ;;  %v48_v3 = vld [vmem:[#allocation3] sm:$0xff]  ;;  %vm58_vm1 = vcmask 130048   ;;  %vm136_vm2 = vcmask 261120   ;;  %vm218_vm3 = vcmask 57344  }
  0x1c   :  { %252 = vmatprep.subr.mxu1 %v338_v0  ;;  %254 = vmatprep.mubr.msk.f32.mxu1 %vm339_vm0, %v338_v0  ;;  %v236_v4 = vld [vmem:[%s391_s2] ss:$0 sm:$0xff]  ;;  %s340_s2 = smov [#allocation8]  }
  0x1d   :  { %246 = vmatpush3.msra.mxu0 %v50_v1  ;;  %v133_v9 = vld [vmem:[%s392_s3] sm:$0x1]  ;;  %s226_s9 = sshll.u32 %s340_s2, 4  ;;  %s227_s9 = int_to_ptr.vmem [resolvable:$true] %s226_s9 }
  0x1e   :  { %247 = vmatprep.subr.mxu0 %v338_v0  ;;  %s308_s3 = scalar_lea.vmem %s227_s9, 16  ;;  %s312_s10 = scalar_lea.vmem %s227_s9, 32 }
  0x1f   :  { %248 = vmatpush3.msra.mxu0 %v49_v2  ;;  %p309_p10 = scmp.ne.s32.totalorder %s227_s9, %s308_s3  ;;  %p313_p11 = scmp.lt.s32.totalorder %s227_s9, %s227_s9 }
  0x20   :  { %250 = vmatmul.mubr.msk.f32.vlgmr.msra.gmra.mxu0 %vm58_vm1, %v48_v3  ;;  %p314_p12 = scmp.lt.s32.totalorder %s312_s10, %s308_s3 }
  0x22   :  { %p315_p13 = por %p314_p12, %p313_p11 }
  0x24   :  { %p316_p0 = pnand %p315_p13, %p309_p10 }
  0xe0   :  { %v128_v5 = vpop.f32.mrf.mxu0 }
  0xe1   :  { %v129_v6 = vadd.f32 %v236_v4, %v128_v5 }
  0xe2   :  { %v251_v7 = vpop.f32.mrf.mxu0 }
  0xe3   :  { %v132_v8 = vmax.f32 %v129_v6, 0.0 }
  0xe5   :  { %253 = vmatpush3.xpose.msk.msra.mxu1 %vm136_vm2, %v132_v8 }
  0xe8   :  { %255 = vmatmul.mubr.msk.f32.vlgmr.msra.gmra.mxu1 %vm136_vm2, %v133_v9 }
 0x1a8   :  { %v209_v11 = vpop.f32.mrf.mxu1 }
 0x1a9   :  { %v210_v12 = vadd.f32 %v209_v11, %v135_v10 }
 0x1aa   :  { %v256_v13 = vpop.f32.mrf.mxu1 }
 0x1ab   :  { %v213_v14 = vsub.f32 0.0, %v210_v12 }
 0x1ad   :  { %v214_v15 = vmul.f32 1.442695, %v213_v14 }
 0x1af   :  { %264 = vpow2.f32 %v214_v15 }
 0x1bc   :  { %v265_v16 = vpop.eup %264 }
 0x1bd   :  { %v216_v17 = vadd.f32 1.0, %v265_v16 }
 0x1bf   :  { %266 = vrcp.f32 %v216_v17 }
 0x1cc   :  { %v267_v18 = vpop.eup %266 }
 0x1cd   :  { %219 = vst.msk [vmem:[#allocation8] sm:$0x1] %vm218_vm3, %v267_v18 }
 0x1ce   :  { %319 = shalt.err (!%p316_p0)
}
 0x1cf   :  { %229 = dma.vmem_to_hbm [thread:$0]  %s227_s9, 16, %s394_s5, [#allocation5]  }
 0x1d0   :  { %332 = dma.done.wait [#allocation5], 16  }
 0x1d1   :  { %333 = vsyncadd [#allocation5], 4294967280 }
 0x1d2   :  { %233 = vsyncpa [#allocation4], 1 }
 0x1d3   :  { %234 = vsyncpa [#allocation7], 1 }
 0x1d4   :  { %235 = vsyncpa [#allocation5], 1 }

</bundles_post_ra>
